<compile_context>
chip_gen: v6e
topology: v6e:2x2x1
jax: 0.10.0
libtpu: 0.0.40
codegen_flags: <defaults>
</compile_context>

<pallas_src>
import functools

import jax
import jax.numpy as jnp
from jax.experimental import pallas as pl
from jax.experimental.pallas import tpu as pltpu


def _round_up(x, m):
    return (x + m - 1) // m * m


def _ln_relu_linear_t(h, g, be, w, b, eps):
    """LayerNorm (over feature axis 0) -> ReLU -> Linear, transposed (F, L) layout.

    h : (F_in, TL) fp32
    g, be : (F_in, 1)     LayerNorm affine params
    w : (F_out, F_in)     PyTorch Linear weight, used directly (y^T = W x^T)
    b : (F_out, 1)        Linear bias
    """
    inv_f = 1.0 / h.shape[0]
    mu = jnp.sum(h, axis=0, keepdims=True) * inv_f          # (1, TL)
    ex2 = jnp.sum(h * h, axis=0, keepdims=True) * inv_f     # (1, TL)  one-pass stats
    var = ex2 - mu * mu
    hn = (h - mu) * jax.lax.rsqrt(var + eps)
    hn = hn * g + be
    hn = jnp.maximum(hn, 0.0)
    return jnp.dot(w, hn, preferred_element_type=jnp.float32) + b


def dynamic_pos_bias_kernel(x_ref,
                            wp_ref, bp_ref,
                            g1_ref, be1_ref, w1_ref, b1_ref,
                            g2_ref, be2_ref, w2_ref, b2_ref,
                            g3_ref, be3_ref, w3_ref, b3_ref,
                            o_ref, *, residual, eps):
    """One L-tile per grid step.  x_ref: (2, TL); o_ref: (num_heads, TL)."""
    x = x_ref[...]                                                         # (2, TL)
    pos = jnp.dot(wp_ref[...], x, preferred_element_type=jnp.float32) + bp_ref[...]
    if residual:
        pos = pos + _ln_relu_linear_t(pos, g1_ref[...], be1_ref[...],
                                      w1_ref[...], b1_ref[...], eps)
        pos = pos + _ln_relu_linear_t(pos, g2_ref[...], be2_ref[...],
                                      w2_ref[...], b2_ref[...], eps)
        pos = _ln_relu_linear_t(pos, g3_ref[...], be3_ref[...],
                                w3_ref[...], b3_ref[...], eps)
    else:
        pos = _ln_relu_linear_t(pos, g1_ref[...], be1_ref[...],
                                w1_ref[...], b1_ref[...], eps)
        pos = _ln_relu_linear_t(pos, g2_ref[...], be2_ref[...],
                                w2_ref[...], b2_ref[...], eps)
        pos = _ln_relu_linear_t(pos, g3_ref[...], be3_ref[...],
                                w3_ref[...], b3_ref[...], eps)
    o_ref[...] = pos.astype(o_ref.dtype)


def dynamic_pos_bias(biases, params, *, residual, eps=1e-5, tl=None):
    """biases: (L, 2) relative coordinates.  Returns (L, num_heads)."""
    L, two = biases.shape
    assert two == 2
    wp = params["pos_proj_w"].astype(jnp.float32)        # (P, 2)
    w1 = params["pos1_lin_w"].astype(jnp.float32)        # (P, P)
    w2 = params["pos2_lin_w"].astype(jnp.float32)        # (P, P)
    w3 = params["pos3_lin_w"].astype(jnp.float32)        # (H, P)
    num_heads = w3.shape[0]

    # Lane-dense tiling of the L axis.
    if tl is None:
        tl = min(512, _round_up(L, 128))
    lp = _round_up(L, tl)
    x_t = jnp.pad(jnp.transpose(biases).astype(jnp.float32), ((0, 0), (0, lp - L)))  # (2, Lp)

    col = lambda v: v.reshape(-1, 1).astype(jnp.float32)  # vectors -> (F, 1) columns
    args = (
        x_t,
        wp, col(params["pos_proj_b"]),
        col(params["pos1_ln_g"]), col(params["pos1_ln_b"]), w1, col(params["pos1_lin_b"]),
        col(params["pos2_ln_g"]), col(params["pos2_ln_b"]), w2, col(params["pos2_lin_b"]),
        col(params["pos3_ln_g"]), col(params["pos3_ln_b"]), w3, col(params["pos3_lin_b"]),
    )

    def full_spec(a):
        nd = a.ndim
        return pl.BlockSpec(a.shape, lambda i, _nd=nd: (0,) * _nd)

    in_specs = [pl.BlockSpec((2, tl), lambda i: (0, i))] + [full_spec(a) for a in args[1:]]

    kernel = functools.partial(dynamic_pos_bias_kernel, residual=residual, eps=eps)
    out_t = pl.pallas_call(
        kernel,
        out_shape=jax.ShapeDtypeStruct((num_heads, lp), biases.dtype),
        grid=(lp // tl,),
        in_specs=in_specs,
        out_specs=pl.BlockSpec((num_heads, tl), lambda i: (0, i)),
        compiler_params=pltpu.CompilerParams(dimension_semantics=("parallel",)),
    )(*args)
    return jnp.transpose(out_t[:, :L])                   # (L, num_heads)


def ref_dynamic_pos_bias(biases, params, *, residual, eps=1e-5):
    """Pure-JAX reference mirroring the PyTorch forward exactly."""
    p = params

    def linear(x, w, b):
        return x @ w.T + b

    def ln(x, g, b):
        mu = jnp.mean(x, axis=-1, keepdims=True)
        var = jnp.mean(jnp.square(x - mu), axis=-1, keepdims=True)
        return (x - mu) / jnp.sqrt(var + eps) * g + b

    def blk(x, g, b, w, bb):
        return linear(jax.nn.relu(ln(x, g, b)), w, bb)

    pos = linear(biases, p["pos_proj_w"], p["pos_proj_b"])
    if residual:
        pos = pos + blk(pos, p["pos1_ln_g"], p["pos1_ln_b"], p["pos1_lin_w"], p["pos1_lin_b"])
        pos = pos + blk(pos, p["pos2_ln_g"], p["pos2_ln_b"], p["pos2_lin_w"], p["pos2_lin_b"])
        pos = blk(pos, p["pos3_ln_g"], p["pos3_ln_b"], p["pos3_lin_w"], p["pos3_lin_b"])
    else:
        pos = blk(pos, p["pos1_ln_g"], p["pos1_ln_b"], p["pos1_lin_w"], p["pos1_lin_b"])
        pos = blk(pos, p["pos2_ln_g"], p["pos2_ln_b"], p["pos2_lin_w"], p["pos2_lin_b"])
        pos = blk(pos, p["pos3_ln_g"], p["pos3_ln_b"], p["pos3_lin_w"], p["pos3_lin_b"])
    return pos


if __name__ == "__main__":
    key = jax.random.PRNGKey(0)
    dim, num_heads = 32, 4
    pos_dim = dim // 4                                    # 8

    # Relative-coordinate table as built by DAT's attention (group size 8):
    gh = gw = 8
    ph = jnp.arange(1 - gh, gh, dtype=jnp.float32)
    pw = jnp.arange(1 - gw, gw, dtype=jnp.float32)
    biases = jnp.stack(jnp.meshgrid(ph, pw, indexing="ij"), axis=0).reshape(2, -1).T  # (225, 2)
    L = biases.shape[0]

    ks = jax.random.split(key, 14)

    def rnd(k, shape, s=0.2):
        return s * jax.random.normal(k, shape, jnp.float32)

    params = {
        "pos_proj_w": rnd(ks[0], (pos_dim, 2)),
        "pos_proj_b": rnd(ks[1], (pos_dim,)),
        "pos1_ln_g": 1.0 + rnd(ks[2], (pos_dim,), 0.05),
        "pos1_ln_b": rnd(ks[3], (pos_dim,), 0.05),
        "pos1_lin_w": rnd(ks[4], (pos_dim, pos_dim)),
        "pos1_lin_b": rnd(ks[5], (pos_dim,)),
        "pos2_ln_g": 1.0 + rnd(ks[6], (pos_dim,), 0.05),
        "pos2_ln_b": rnd(ks[7], (pos_dim,), 0.05),
        "pos2_lin_w": rnd(ks[8], (pos_dim, pos_dim)),
        "pos2_lin_b": rnd(ks[9], (pos_dim,)),
        "pos3_ln_g": 1.0 + rnd(ks[10], (pos_dim,), 0.05),
        "pos3_ln_b": rnd(ks[11], (pos_dim,), 0.05),
        "pos3_lin_w": rnd(ks[12], (num_heads, pos_dim)),
        "pos3_lin_b": rnd(ks[13], (num_heads,)),
    }

    for residual in (True, False):
        out = jax.block_until_ready(dynamic_pos_bias(biases, params, residual=residual))
        ref = ref_dynamic_pos_bias(biases, params, residual=residual)
        assert out.shape == (L, num_heads), out.shape
        max_err = float(jnp.max(jnp.abs(out - ref)))
        assert jnp.allclose(out, ref, atol=1e-4, rtol=1e-4), (residual, max_err)

    print("KERNEL_OK")
</pallas_src>

<mosaic_0001>
module attributes {stable_mosaic.version = 11 : i64} {
  func.func @dynamic_pos_bias_kernel(%arg0: i32, %arg1: memref<2x256xf32, #tpu.memory_space<vmem>>, %arg2: memref<8x2xf32, #tpu.memory_space<vmem>>, %arg3: memref<8x1xf32, #tpu.memory_space<vmem>>, %arg4: memref<8x1xf32, #tpu.memory_space<vmem>>, %arg5: memref<8x1xf32, #tpu.memory_space<vmem>>, %arg6: memref<8x8xf32, #tpu.memory_space<vmem>>, %arg7: memref<8x1xf32, #tpu.memory_space<vmem>>, %arg8: memref<8x1xf32, #tpu.memory_space<vmem>>, %arg9: memref<8x1xf32, #tpu.memory_space<vmem>>, %arg10: memref<8x8xf32, #tpu.memory_space<vmem>>, %arg11: memref<8x1xf32, #tpu.memory_space<vmem>>, %arg12: memref<8x1xf32, #tpu.memory_space<vmem>>, %arg13: memref<8x1xf32, #tpu.memory_space<vmem>>, %arg14: memref<4x8xf32, #tpu.memory_space<vmem>>, %arg15: memref<4x1xf32, #tpu.memory_space<vmem>>, %arg16: memref<4x256xf32, #tpu.memory_space<vmem>>) attributes {dimension_semantics = [#tpu.dimension_semantics<parallel>], iteration_bounds = array<i64: 1>, scalar_prefetch = 0 : i64, scratch_operands = 0 : i64, tpu.core_type = #tpu.core_type<tc>, window_params = [{transform_indices = @transform_0, window_bounds = array<i64: 2, 256>}, {pipeline_mode = #tpu.pipeline_mode<synchronous>, transform_indices = @transform_1, window_bounds = array<i64: 8, 2>}, {pipeline_mode = #tpu.pipeline_mode<synchronous>, transform_indices = @transform_2, window_bounds = array<i64: 8, 1>}, {pipeline_mode = #tpu.pipeline_mode<synchronous>, transform_indices = @transform_3, window_bounds = array<i64: 8, 1>}, {pipeline_mode = #tpu.pipeline_mode<synchronous>, transform_indices = @transform_4, window_bounds = array<i64: 8, 1>}, {pipeline_mode = #tpu.pipeline_mode<synchronous>, transform_indices = @transform_5, window_bounds = array<i64: 8, 8>}, {pipeline_mode = #tpu.pipeline_mode<synchronous>, transform_indices = @transform_6, window_bounds = array<i64: 8, 1>}, {pipeline_mode = #tpu.pipeline_mode<synchronous>, transform_indices = @transform_7, window_bounds = array<i64: 8, 1>}, {pipeline_mode = #tpu.pipeline_mode<synchronous>, transform_indices = @transform_8, window_bounds = array<i64: 8, 1>}, {pipeline_mode = #tpu.pipeline_mode<synchronous>, transform_indices = @transform_9, window_bounds = array<i64: 8, 8>}, {pipeline_mode = #tpu.pipeline_mode<synchronous>, transform_indices = @transform_10, window_bounds = array<i64: 8, 1>}, {pipeline_mode = #tpu.pipeline_mode<synchronous>, transform_indices = @transform_11, window_bounds = array<i64: 8, 1>}, {pipeline_mode = #tpu.pipeline_mode<synchronous>, transform_indices = @transform_12, window_bounds = array<i64: 8, 1>}, {pipeline_mode = #tpu.pipeline_mode<synchronous>, transform_indices = @transform_13, window_bounds = array<i64: 4, 8>}, {pipeline_mode = #tpu.pipeline_mode<synchronous>, transform_indices = @transform_14, window_bounds = array<i64: 4, 1>}, {transform_indices = @transform_15, window_bounds = array<i64: 4, 256>}]} {
    %c0 = arith.constant 0 : index
    %c0_0 = arith.constant 0 : index
    %0 = vector.load %arg1[%c0, %c0_0] : memref<2x256xf32, #tpu.memory_space<vmem>>, vector<2x256xf32>
    %c0_1 = arith.constant 0 : index
    %c0_2 = arith.constant 0 : index
    %1 = vector.load %arg2[%c0_1, %c0_2] : memref<8x2xf32, #tpu.memory_space<vmem>>, vector<8x2xf32>
    %cst = arith.constant dense<0.000000e+00> : vector<8x256xf32>
    %2 = tpu.matmul %1, %0, %cst {dimension_numbers = #tpu.dot_dimension_numbers<[1], [0], [0], [1], [0, 0, 1, 1], [], []>} : vector<8x2xf32>, vector<2x256xf32>, vector<8x256xf32> -> vector<8x256xf32>
    %c0_3 = arith.constant 0 : index
    %c0_4 = arith.constant 0 : index
    %3 = vector.load %arg3[%c0_3, %c0_4] : memref<8x1xf32, #tpu.memory_space<vmem>>, vector<8x1xf32>
    %4 = vector.broadcast %3 : vector<8x1xf32> to vector<8x256xf32>
    %5 = arith.addf %2, %4 : vector<8x256xf32>
    %c0_5 = arith.constant 0 : index
    %c0_6 = arith.constant 0 : index
    %6 = vector.load %arg4[%c0_5, %c0_6] : memref<8x1xf32, #tpu.memory_space<vmem>>, vector<8x1xf32>
    %c0_7 = arith.constant 0 : index
    %c0_8 = arith.constant 0 : index
    %7 = vector.load %arg5[%c0_7, %c0_8] : memref<8x1xf32, #tpu.memory_space<vmem>>, vector<8x1xf32>
    %c0_9 = arith.constant 0 : index
    %c0_10 = arith.constant 0 : index
    %8 = vector.load %arg6[%c0_9, %c0_10] : memref<8x8xf32, #tpu.memory_space<vmem>>, vector<8x8xf32>
    %c0_11 = arith.constant 0 : index
    %c0_12 = arith.constant 0 : index
    %9 = vector.load %arg7[%c0_11, %c0_12] : memref<8x1xf32, #tpu.memory_space<vmem>>, vector<8x1xf32>
    %cst_13 = arith.constant dense<0.000000e+00> : vector<256xf32>
    %10 = vector.multi_reduction <add>, %5, %cst_13 [0] : vector<8x256xf32> to vector<256xf32>
    %11 = vector.shape_cast %10 : vector<256xf32> to vector<1x256xf32>
    %cst_14 = arith.constant 1.250000e-01 : f32
    %12 = vector.broadcast %cst_14 : f32 to vector<1x256xf32>
    %13 = arith.mulf %11, %12 : vector<1x256xf32>
    %14 = arith.mulf %5, %5 : vector<8x256xf32>
    %cst_15 = arith.constant dense<0.000000e+00> : vector<256xf32>
    %15 = vector.multi_reduction <add>, %14, %cst_15 [0] : vector<8x256xf32> to vector<256xf32>
    %16 = vector.shape_cast %15 : vector<256xf32> to vector<1x256xf32>
    %cst_16 = arith.constant 1.250000e-01 : f32
    %17 = vector.broadcast %cst_16 : f32 to vector<1x256xf32>
    %18 = arith.mulf %16, %17 : vector<1x256xf32>
    %19 = arith.mulf %13, %13 : vector<1x256xf32>
    %20 = arith.subf %18, %19 : vector<1x256xf32>
    %21 = vector.broadcast %13 : vector<1x256xf32> to vector<8x256xf32>
    %22 = arith.subf %5, %21 : vector<8x256xf32>
    %cst_17 = arith.constant 9.99999974E-6 : f32
    %23 = vector.broadcast %cst_17 : f32 to vector<1x256xf32>
    %24 = arith.addf %20, %23 : vector<1x256xf32>
    %25 = math.rsqrt %24 : vector<1x256xf32>
    %26 = vector.broadcast %25 : vector<1x256xf32> to vector<8x256xf32>
    %27 = arith.mulf %22, %26 : vector<8x256xf32>
    %28 = vector.broadcast %6 : vector<8x1xf32> to vector<8x256xf32>
    %29 = arith.mulf %27, %28 : vector<8x256xf32>
    %30 = vector.broadcast %7 : vector<8x1xf32> to vector<8x256xf32>
    %31 = arith.addf %29, %30 : vector<8x256xf32>
    %cst_18 = arith.constant 0.000000e+00 : f32
    %32 = vector.broadcast %cst_18 : f32 to vector<8x256xf32>
    %33 = arith.maximumf %31, %32 : vector<8x256xf32>
    %cst_19 = arith.constant dense<0.000000e+00> : vector<8x256xf32>
    %34 = tpu.matmul %8, %33, %cst_19 {dimension_numbers = #tpu.dot_dimension_numbers<[1], [0], [0], [1], [0, 0, 1, 1], [], []>} : vector<8x8xf32>, vector<8x256xf32>, vector<8x256xf32> -> vector<8x256xf32>
    %35 = vector.broadcast %9 : vector<8x1xf32> to vector<8x256xf32>
    %36 = arith.addf %34, %35 : vector<8x256xf32>
    %37 = arith.addf %5, %36 : vector<8x256xf32>
    %c0_20 = arith.constant 0 : index
    %c0_21 = arith.constant 0 : index
    %38 = vector.load %arg8[%c0_20, %c0_21] : memref<8x1xf32, #tpu.memory_space<vmem>>, vector<8x1xf32>
    %c0_22 = arith.constant 0 : index
    %c0_23 = arith.constant 0 : index
    %39 = vector.load %arg9[%c0_22, %c0_23] : memref<8x1xf32, #tpu.memory_space<vmem>>, vector<8x1xf32>
    %c0_24 = arith.constant 0 : index
    %c0_25 = arith.constant 0 : index
    %40 = vector.load %arg10[%c0_24, %c0_25] : memref<8x8xf32, #tpu.memory_space<vmem>>, vector<8x8xf32>
    %c0_26 = arith.constant 0 : index
    %c0_27 = arith.constant 0 : index
    %41 = vector.load %arg11[%c0_26, %c0_27] : memref<8x1xf32, #tpu.memory_space<vmem>>, vector<8x1xf32>
    %cst_28 = arith.constant dense<0.000000e+00> : vector<256xf32>
    %42 = vector.multi_reduction <add>, %37, %cst_28 [0] : vector<8x256xf32> to vector<256xf32>
    %43 = vector.shape_cast %42 : vector<256xf32> to vector<1x256xf32>
    %cst_29 = arith.constant 1.250000e-01 : f32
    %44 = vector.broadcast %cst_29 : f32 to vector<1x256xf32>
    %45 = arith.mulf %43, %44 : vector<1x256xf32>
    %46 = arith.mulf %37, %37 : vector<8x256xf32>
    %cst_30 = arith.constant dense<0.000000e+00> : vector<256xf32>
    %47 = vector.multi_reduction <add>, %46, %cst_30 [0] : vector<8x256xf32> to vector<256xf32>
    %48 = vector.shape_cast %47 : vector<256xf32> to vector<1x256xf32>
    %cst_31 = arith.constant 1.250000e-01 : f32
    %49 = vector.broadcast %cst_31 : f32 to vector<1x256xf32>
    %50 = arith.mulf %48, %49 : vector<1x256xf32>
    %51 = arith.mulf %45, %45 : vector<1x256xf32>
    %52 = arith.subf %50, %51 : vector<1x256xf32>
    %53 = vector.broadcast %45 : vector<1x256xf32> to vector<8x256xf32>
    %54 = arith.subf %37, %53 : vector<8x256xf32>
    %cst_32 = arith.constant 9.99999974E-6 : f32
    %55 = vector.broadcast %cst_32 : f32 to vector<1x256xf32>
    %56 = arith.addf %52, %55 : vector<1x256xf32>
    %57 = math.rsqrt %56 : vector<1x256xf32>
    %58 = vector.broadcast %57 : vector<1x256xf32> to vector<8x256xf32>
    %59 = arith.mulf %54, %58 : vector<8x256xf32>
    %60 = vector.broadcast %38 : vector<8x1xf32> to vector<8x256xf32>
    %61 = arith.mulf %59, %60 : vector<8x256xf32>
    %62 = vector.broadcast %39 : vector<8x1xf32> to vector<8x256xf32>
    %63 = arith.addf %61, %62 : vector<8x256xf32>
    %cst_33 = arith.constant 0.000000e+00 : f32
    %64 = vector.broadcast %cst_33 : f32 to vector<8x256xf32>
    %65 = arith.maximumf %63, %64 : vector<8x256xf32>
    %cst_34 = arith.constant dense<0.000000e+00> : vector<8x256xf32>
    %66 = tpu.matmul %40, %65, %cst_34 {dimension_numbers = #tpu.dot_dimension_numbers<[1], [0], [0], [1], [0, 0, 1, 1], [], []>} : vector<8x8xf32>, vector<8x256xf32>, vector<8x256xf32> -> vector<8x256xf32>
    %67 = vector.broadcast %41 : vector<8x1xf32> to vector<8x256xf32>
    %68 = arith.addf %66, %67 : vector<8x256xf32>
    %69 = arith.addf %37, %68 : vector<8x256xf32>
    %c0_35 = arith.constant 0 : index
    %c0_36 = arith.constant 0 : index
    %70 = vector.load %arg12[%c0_35, %c0_36] : memref<8x1xf32, #tpu.memory_space<vmem>>, vector<8x1xf32>
    %c0_37 = arith.constant 0 : index
    %c0_38 = arith.constant 0 : index
    %71 = vector.load %arg13[%c0_37, %c0_38] : memref<8x1xf32, #tpu.memory_space<vmem>>, vector<8x1xf32>
    %c0_39 = arith.constant 0 : index
    %c0_40 = arith.constant 0 : index
    %72 = vector.load %arg14[%c0_39, %c0_40] : memref<4x8xf32, #tpu.memory_space<vmem>>, vector<4x8xf32>
    %c0_41 = arith.constant 0 : index
    %c0_42 = arith.constant 0 : index
    %73 = vector.load %arg15[%c0_41, %c0_42] : memref<4x1xf32, #tpu.memory_space<vmem>>, vector<4x1xf32>
    %cst_43 = arith.constant dense<0.000000e+00> : vector<256xf32>
    %74 = vector.multi_reduction <add>, %69, %cst_43 [0] : vector<8x256xf32> to vector<256xf32>
    %75 = vector.shape_cast %74 : vector<256xf32> to vector<1x256xf32>
    %cst_44 = arith.constant 1.250000e-01 : f32
    %76 = vector.broadcast %cst_44 : f32 to vector<1x256xf32>
    %77 = arith.mulf %75, %76 : vector<1x256xf32>
    %78 = arith.mulf %69, %69 : vector<8x256xf32>
    %cst_45 = arith.constant dense<0.000000e+00> : vector<256xf32>
    %79 = vector.multi_reduction <add>, %78, %cst_45 [0] : vector<8x256xf32> to vector<256xf32>
    %80 = vector.shape_cast %79 : vector<256xf32> to vector<1x256xf32>
    %cst_46 = arith.constant 1.250000e-01 : f32
    %81 = vector.broadcast %cst_46 : f32 to vector<1x256xf32>
    %82 = arith.mulf %80, %81 : vector<1x256xf32>
    %83 = arith.mulf %77, %77 : vector<1x256xf32>
    %84 = arith.subf %82, %83 : vector<1x256xf32>
    %85 = vector.broadcast %77 : vector<1x256xf32> to vector<8x256xf32>
    %86 = arith.subf %69, %85 : vector<8x256xf32>
    %cst_47 = arith.constant 9.99999974E-6 : f32
    %87 = vector.broadcast %cst_47 : f32 to vector<1x256xf32>
    %88 = arith.addf %84, %87 : vector<1x256xf32>
    %89 = math.rsqrt %88 : vector<1x256xf32>
    %90 = vector.broadcast %89 : vector<1x256xf32> to vector<8x256xf32>
    %91 = arith.mulf %86, %90 : vector<8x256xf32>
    %92 = vector.broadcast %70 : vector<8x1xf32> to vector<8x256xf32>
    %93 = arith.mulf %91, %92 : vector<8x256xf32>
    %94 = vector.broadcast %71 : vector<8x1xf32> to vector<8x256xf32>
    %95 = arith.addf %93, %94 : vector<8x256xf32>
    %cst_48 = arith.constant 0.000000e+00 : f32
    %96 = vector.broadcast %cst_48 : f32 to vector<8x256xf32>
    %97 = arith.maximumf %95, %96 : vector<8x256xf32>
    %cst_49 = arith.constant dense<0.000000e+00> : vector<4x256xf32>
    %98 = tpu.matmul %72, %97, %cst_49 {dimension_numbers = #tpu.dot_dimension_numbers<[1], [0], [0], [1], [0, 0, 1, 1], [], []>} : vector<4x8xf32>, vector<8x256xf32>, vector<4x256xf32> -> vector<4x256xf32>
    %99 = vector.broadcast %73 : vector<4x1xf32> to vector<4x256xf32>
    %100 = arith.addf %98, %99 : vector<4x256xf32>
    %c0_50 = arith.constant 0 : index
    %c0_51 = arith.constant 0 : index
    %101 = vector.load %arg16[%c0_50, %c0_51] : memref<4x256xf32, #tpu.memory_space<vmem>>, vector<4x256xf32>
    tpu.vector_store %arg16[%c0_50, %c0_51], %100 {strides = array<i32>} : memref<4x256xf32, #tpu.memory_space<vmem>>, vector<4x256xf32>,
    return
  }
  func.func @transform_0(%arg0: i32) -> (i32, i32) {
    %c0_i32 = arith.constant 0 : i32
    %c0_i32_0 = arith.constant 0 : i32
    return %c0_i32, %arg0 : i32, i32
  }
  func.func @transform_1(%arg0: i32) -> (i32, i32) {
    %c0_i32 = arith.constant 0 : i32
    %c0_i32_0 = arith.constant 0 : i32
    %c0_i32_1 = arith.constant 0 : i32
    return %c0_i32, %c0_i32_0 : i32, i32
  }
  func.func @transform_2(%arg0: i32) -> (i32, i32) {
    %c0_i32 = arith.constant 0 : i32
    %c0_i32_0 = arith.constant 0 : i32
    %c0_i32_1 = arith.constant 0 : i32
    return %c0_i32, %c0_i32_0 : i32, i32
  }
  func.func @transform_3(%arg0: i32) -> (i32, i32) {
    %c0_i32 = arith.constant 0 : i32
    %c0_i32_0 = arith.constant 0 : i32
    %c0_i32_1 = arith.constant 0 : i32
    return %c0_i32, %c0_i32_0 : i32, i32
  }
  func.func @transform_4(%arg0: i32) -> (i32, i32) {
    %c0_i32 = arith.constant 0 : i32
    %c0_i32_0 = arith.constant 0 : i32
    %c0_i32_1 = arith.constant 0 : i32
    return %c0_i32, %c0_i32_0 : i32, i32
  }
  func.func @transform_5(%arg0: i32) -> (i32, i32) {
    %c0_i32 = arith.constant 0 : i32
    %c0_i32_0 = arith.constant 0 : i32
    %c0_i32_1 = arith.constant 0 : i32
    return %c0_i32, %c0_i32_0 : i32, i32
  }
  func.func @transform_6(%arg0: i32) -> (i32, i32) {
    %c0_i32 = arith.constant 0 : i32
    %c0_i32_0 = arith.constant 0 : i32
    %c0_i32_1 = arith.constant 0 : i32
    return %c0_i32, %c0_i32_0 : i32, i32
  }
  func.func @transform_7(%arg0: i32) -> (i32, i32) {
    %c0_i32 = arith.constant 0 : i32
    %c0_i32_0 = arith.constant 0 : i32
    %c0_i32_1 = arith.constant 0 : i32
    return %c0_i32, %c0_i32_0 : i32, i32
  }
  func.func @transform_8(%arg0: i32) -> (i32, i32) {
    %c0_i32 = arith.constant 0 : i32
    %c0_i32_0 = arith.constant 0 : i32
    %c0_i32_1 = arith.constant 0 : i32
    return %c0_i32, %c0_i32_0 : i32, i32
  }
  func.func @transform_9(%arg0: i32) -> (i32, i32) {
    %c0_i32 = arith.constant 0 : i32
    %c0_i32_0 = arith.constant 0 : i32
    %c0_i32_1 = arith.constant 0 : i32
    return %c0_i32, %c0_i32_0 : i32, i32
  }
  func.func @transform_10(%arg0: i32) -> (i32, i32) {
    %c0_i32 = arith.constant 0 : i32
    %c0_i32_0 = arith.constant 0 : i32
    %c0_i32_1 = arith.constant 0 : i32
    return %c0_i32, %c0_i32_0 : i32, i32
  }
  func.func @transform_11(%arg0: i32) -> (i32, i32) {
    %c0_i32 = arith.constant 0 : i32
    %c0_i32_0 = arith.constant 0 : i32
    %c0_i32_1 = arith.constant 0 : i32
    return %c0_i32, %c0_i32_0 : i32, i32
  }
  func.func @transform_12(%arg0: i32) -> (i32, i32) {
    %c0_i32 = arith.constant 0 : i32
    %c0_i32_0 = arith.constant 0 : i32
    %c0_i32_1 = arith.constant 0 : i32
    return %c0_i32, %c0_i32_0 : i32, i32
  }
  func.func @transform_13(%arg0: i32) -> (i32, i32) {
    %c0_i32 = arith.constant 0 : i32
    %c0_i32_0 = arith.constant 0 : i32
    %c0_i32_1 = arith.constant 0 : i32
    return %c0_i32, %c0_i32_0 : i32, i32
  }
  func.func @transform_14(%arg0: i32) -> (i32, i32) {
    %c0_i32 = arith.constant 0 : i32
    %c0_i32_0 = arith.constant 0 : i32
    %c0_i32_1 = arith.constant 0 : i32
    return %c0_i32, %c0_i32_0 : i32, i32
  }
  func.func @transform_15(%arg0: i32) -> (i32, i32) {
    %c0_i32 = arith.constant 0 : i32
    %c0_i32_0 = arith.constant 0 : i32
    return %c0_i32, %arg0 : i32, i32
  }
}

</mosaic_0001>

<bundles_post_ra>
// kernel: tpu_custom_call.1
= control target key start
LH: loop header
LB: loop body
LE: loop exit
PB: predicated region body
PF: predicated region fallthrough
CT: control target
= control target key end

     0   :  { %vm72_vm0 = vcmask 1041408   ;;  %v641_v2 = vmov 0.0   ;;  %vm68_vm1 = vcmask 15360   ;;  %v642_v5 = vmov 0   ;;  %s811_s0 = inlined_call_operand.vmem [shape: f32[2,256], index: 0, kind: input, shape index: {}]   ;;  %s812_s1 = inlined_call_operand.vmem [shape: f32[8,2], index: 1, kind: input, shape index: {}]   ;;  %s813_s2 = inlined_call_operand.vmem [shape: f32[8,1], index: 2, kind: input, shape index: {}]   ;;  %s814_s3 = inlined_call_operand.vmem [shape: f32[8,1], index: 3, kind: input, shape index: {}]   ;;  %s815_s4 = inlined_call_operand.vmem [shape: f32[8,1], index: 4, kind: input, shape index: {}]   ;;  %s816_s5 = inlined_call_operand.vmem [shape: f32[8,8], index: 5, kind: input, shape index: {}]   ;;  %s817_s6 = inlined_call_operand.vmem [shape: f32[8,1], index: 6, kind: input, shape index: {}]   ;;  %s818_s7 = inlined_call_operand.vmem [shape: f32[8,1], index: 7, kind: input, shape index: {}]   ;;  %s819_s8 = inlined_call_operand.vmem [shape: f32[8,1], index: 8, kind: input, shape index: {}]   ;;  %s820_s9 = inlined_call_operand.vmem [shape: f32[8,8], index: 9, kind: input, shape index: {}]   ;;  %s821_s10 = inlined_call_operand.vmem [shape: f32[8,1], index: 10, kind: input, shape index: {}]   ;;  %s822_s11 = inlined_call_operand.vmem [shape: f32[8,1], index: 11, kind: input, shape index: {}]   ;;  %s823_s12 = inlined_call_operand.vmem [shape: f32[8,1], index: 12, kind: input, shape index: {}]   ;;  %s824_s13 = inlined_call_operand.vmem [shape: f32[4,8], index: 13, kind: input, shape index: {}]   ;;  %s825_s14 = inlined_call_operand.vmem [shape: f32[4,1], index: 14, kind: input, shape index: {}]   ;;  %s826_s15 = inlined_call_operand.hbm [shape: f32[4,256], index: 15, kind: output, shape index: {}]  }
   0x1   :  { %v595_v0 = vld.sshfl [vmem:[%s811_s0] sm:$0x33 pattern:$0x76325410]  ;;  %141 = vmatprep.mubr.f32.mxu0 %v641_v2  ;;  %283 = vmatprep.mubr.f32.mxu1 %v641_v2 }
   0x2   :  { %v67_v1 = vcombine.high %v595_v0, %v595_v0  ;;  %v53_v3 = vld [vmem:[%s813_s2] sm:$0xff]  ;;  %605 = vset.pattern.permute.xlu0 %v642_v5  ;;  %606 = vset.pattern.permute.xlu1 %v642_v5 }
   0x3   :  { %v52_v4 = vld [vmem:[%s812_s1] sm:$0xff]  ;;  %56 = vperm.xlu0 %605, %v53_v3  }
   0x4   :  { %596 = vmatprep.subr.msk.mxu0 %vm72_vm0, %v67_v1  ;;  %v149_v6 = vld [vmem:[%s815_s4] sm:$0xff] }
   0x5   :  { %597 = vmatpush1.msk.msra.mxu0 %vm72_vm0, %v595_v0  ;;  %v148_v7 = vld [vmem:[%s814_s3] sm:$0xff]  ;;  %203 = vperm.xlu1 %606, %v149_v6  }
   0x6   :  { %20 = vsyncpa [#allocation3], 0  ;;  %598 = vmatmul.mubr.msk.f32.vlgmr.msra.gmra.mxu0 %vm68_vm1, %v52_v4  ;;  %v151_v8 = vld [vmem:[%s817_s6] sm:$0xff]  ;;  %vm215_vm2 = vcmask 64512  }
   0x7   :  { %426 = vmatprep.mubr.f32.mxu0 %v641_v2  ;;  %196 = vperm.xlu0 %605, %v148_v7   ;;  %v292_v9 = vld [vmem:[%s818_s7] sm:$0xff] }
   0x8   :  { %v293_v10 = vld [vmem:[%s819_s8] sm:$0xff] }
   0x9   :  { %212 = vperm.xlu1 %606, %v151_v8   ;;  %v295_v11 = vld [vmem:[%s821_s10] sm:$0xff] }
   0xa   :  { %v435_v12 = vld [vmem:[%s822_s11] sm:$0xff] }
   0xb   :  { %340 = vperm.xlu0 %605, %v292_v9   ;;  %v436_v13 = vld [vmem:[%s823_s12] sm:$0xff] }
   0xc   :  { %v438_v14 = vld [vmem:[%s825_s14] sm:$0xf]  ;;  %s643_s14 = smov [#allocation2]  }
   0xd   :  { %347 = vperm.xlu1 %606, %v293_v10   ;;  %v150_v7 = vld [vmem:[%s816_s5] sm:$0xff]  ;;  %s587_s20 = sshll.u32 %s643_s14, 4  ;;  %s588_s20 = int_to_ptr.vmem [resolvable:$true] %s587_s20 }
   0xe   :  { %s619_s21 = scalar_lea.vmem %s588_s20, 128  ;;  %p624_p1 = scmp.lt.s32.totalorder %s588_s20, %s588_s20 }
   0xf   :  { %356 = vperm.xlu0 %605, %v295_v11   ;;  %p620_p0 = scmp.ne.s32.totalorder %s588_s20, %s619_s21  ;;  %p625_p2 = scmp.lt.s32.totalorder %s619_s21, %s619_s21 }
  0x11   :  { %483 = vperm.xlu1 %606, %v435_v12   ;;  %p626_p3 = por %p625_p2, %p624_p1 }
  0x13   :  { %490 = vperm.xlu0 %605, %v436_v13   ;;  %p627_p4 = pnand %p626_p3, %p620_p0 }
  0x15   :  { %499 = vperm.xlu1 %606, %v438_v14  }
  0x7e   :  { %v57_v15 = vpop.permute.xlu0 %56 }
  0x80   :  { %v204_v0 = vpop.permute.xlu1 %203 }
  0x82   :  { %v197_v59 = vpop.permute.xlu0 %196 }
  0x84   :  { %v213_v8 = vpop.permute.xlu1 %212 }
  0xc6   :  { %v143_v16 = vpop.f32.mrf.mxu0 }
  0xc7   :  { %v763_v17 = vadd.f32 %v143_v16, %v57_v15 }
  0xc8   :  { %v145_v18 = vpop.f32.mrf.mxu0 }
  0xc9   :  { %v152_v19 = vrot.slane %v763_v17, 4  ;;  %v166_v20 = vmul.f32 %v763_v17, %v763_v17  ;;  %v768_v21 = vadd.f32 %v145_v18, %v57_v15 }
  0xcb   :  { %v153_v22 = vadd.f32 %v152_v19, %v763_v17  ;;  %v168_v23 = vrot.slane %v166_v20, 4  ;;  %v158_v24 = vrot.slane %v768_v21, 4  ;;  %v167_v25 = vmul.f32 %v768_v21, %v768_v21 }
  0xcd   :  { %v169_v26 = vadd.f32 %v168_v23, %v166_v20  ;;  %v174_v27 = vrot.slane %v167_v25, 4  ;;  %v154_v28 = vrot.slane %v153_v22, 2  ;;  %v159_v29 = vadd.f32 %v158_v24, %v768_v21 }
  0xcf   :  { %v170_v30 = vrot.slane %v169_v26, 2  ;;  %v175_v31 = vadd.f32 %v174_v27, %v167_v25  ;;  %v155_v32 = vadd.f32 %v154_v28, %v153_v22  ;;  %v160_v33 = vrot.slane %v159_v29, 2 }
  0xd1   :  { %v171_v34 = vadd.f32 %v170_v30, %v169_v26  ;;  %v176_v35 = vrot.slane %v175_v31, 2  ;;  %v156_v36 = vrot.slane %v155_v32, 1  ;;  %v161_v37 = vadd.f32 %v160_v33, %v159_v29 }
  0xd3   :  { %v157_v38 = vadd.f32 %v156_v36, %v155_v32  ;;  %v172_v39 = vrot.slane %v171_v34, 1  ;;  %v162_v40 = vrot.slane %v161_v37, 1  ;;  %v177_v41 = vadd.f32 %v176_v35, %v175_v31 }
  0xd5   :  { %v164_v42 = vmul.f32 0.125, %v157_v38  ;;  %v173_v43 = vadd.f32 %v172_v39, %v171_v34  ;;  %v163_v44 = vadd.f32 %v162_v40, %v161_v37  ;;  %v178_v45 = vrot.slane %v177_v41, 1 }
  0xd7   :  { %v180_v46 = vmul.f32 0.125, %v173_v43  ;;  %v182_v47 = vmul.f32 %v164_v42, %v164_v42  ;;  %v165_v48 = vmul.f32 0.125, %v163_v44  ;;  %v179_v49 = vadd.f32 %v178_v45, %v177_v41 }
  0xd8   :  { %v186_v56 = vsub.f32 %v763_v17, %v164_v42 }
  0xd9   :  { %v184_v50 = vsub.f32 %v180_v46, %v182_v47  ;;  %v183_v51 = vmul.f32 %v165_v48, %v165_v48  ;;  %v181_v52 = vmul.f32 0.125, %v179_v49  ;;  %v187_v60 = vsub.f32 %v768_v21, %v165_v48 }
  0xdb   :  { %v188_v53 = vadd.f32 1e-05, %v184_v50  ;;  %v185_v54 = vsub.f32 %v181_v52, %v183_v51 }
  0xdd   :  { %607 = vrsqrt.f32 %v188_v53  ;;  %v189_v55 = vadd.f32 1e-05, %v185_v54 }
  0xdf   :  { %609 = vrsqrt.f32 %v189_v55  ;;  %v341_v55 = vpop.permute.xlu0 %340 }
  0xea   :  { %v608_v57 = vpop.eup %607 }
  0xeb   :  { %v192_v58 = vmul.f32 %v608_v57, %v186_v56 }
  0xec   :  { %v610_v61 = vpop.eup %609 }
  0xed   :  { %v199_v62 = vmul.f32 %v197_v59, %v192_v58  ;;  %v193_v63 = vmul.f32 %v610_v61, %v187_v60  ;;  %v348_v58 = vpop.permute.xlu1 %347 }
  0xef   :  { %v200_v1 = vmul.f32 %v197_v59, %v193_v63  ;;  %v206_v3 = vadd.f32 %v204_v0, %v199_v62 }
  0xf1   :  { %v207_v4 = vadd.f32 %v204_v0, %v200_v1  ;;  %v208_v6 = vmax.f32 %v206_v3, 0.0  ;;  %v294_v0 = vld [vmem:[%s820_s9] sm:$0xff]  ;;  %v357_v1 = vpop.permute.xlu0 %356 }
  0xf3   :  { %v209_v5 = vmax.f32 %v207_v4, 0.0 }
  0xf5   :  { %249 = vmatprep.subr.mxu1 %v209_v5 }
  0xf6   :  { %250 = vmatpush1.msra.mxu1 %v208_v6 }
  0xf7   :  { %599 = vmatmul.mubr.msk.f32.vlgmr.msra.gmra.mxu1 %vm215_vm2, %v150_v7 }
  0xf8   :  { %569 = vmatprep.mubr.f32.mxu1 %v641_v2 }
 0x1b7   :  { %v285_v9 = vpop.f32.mrf.mxu1 }
 0x1b8   :  { %v286_v10 = vadd.f32 %v285_v9, %v213_v8 }
 0x1b9   :  { %v287_v11 = vpop.f32.mrf.mxu1 }
 0x1ba   :  { %v783_v12 = vadd.f32 %v286_v10, %v763_v17  ;;  %v288_v13 = vadd.f32 %v287_v11, %v213_v8 }
 0x1bc   :  { %v296_v14 = vrot.slane %v783_v12, 4  ;;  %v310_v15 = vmul.f32 %v783_v12, %v783_v12  ;;  %v789_v16 = vadd.f32 %v288_v13, %v768_v21 }
 0x1be   :  { %v297_v18 = vadd.f32 %v296_v14, %v783_v12  ;;  %v312_v19 = vrot.slane %v310_v15, 4  ;;  %v302_v2 = vrot.slane %v789_v16, 4  ;;  %v311_v20 = vmul.f32 %v789_v16, %v789_v16 }
 0x1c0   :  { %v298_v22 = vrot.slane %v297_v18, 2  ;;  %v313_v17 = vadd.f32 %v312_v19, %v310_v15  ;;  %v303_v23 = vadd.f32 %v302_v2, %v789_v16  ;;  %v318_v24 = vrot.slane %v311_v20, 4 }
 0x1c2   :  { %v299_v25 = vadd.f32 %v298_v22, %v297_v18  ;;  %v314_v26 = vrot.slane %v313_v17, 2  ;;  %v319_v27 = vadd.f32 %v318_v24, %v311_v20  ;;  %v304_v28 = vrot.slane %v303_v23, 2 }
 0x1c4   :  { %v315_v29 = vadd.f32 %v314_v26, %v313_v17  ;;  %v320_v21 = vrot.slane %v319_v27, 2  ;;  %v305_v30 = vadd.f32 %v304_v28, %v303_v23  ;;  %v300_v31 = vrot.slane %v299_v25, 1 }
 0x1c6   :  { %v316_v32 = vrot.slane %v315_v29, 1  ;;  %v321_v33 = vadd.f32 %v320_v21, %v319_v27  ;;  %v306_v34 = vrot.slane %v305_v30, 1  ;;  %v301_v35 = vadd.f32 %v300_v31, %v299_v25 }
 0x1c8   :  { %v317_v36 = vadd.f32 %v316_v32, %v315_v29  ;;  %v307_v37 = vadd.f32 %v306_v34, %v305_v30  ;;  %v322_v38 = vrot.slane %v321_v33, 1  ;;  %v308_v39 = vmul.f32 0.125, %v301_v35 }
 0x1ca   :  { %v324_v40 = vmul.f32 0.125, %v317_v36  ;;  %v309_v41 = vmul.f32 0.125, %v307_v37  ;;  %v323_v42 = vadd.f32 %v322_v38, %v321_v33  ;;  %v326_v43 = vmul.f32 %v308_v39, %v308_v39 }
 0x1cb   :  { %v330_v50 = vsub.f32 %v783_v12, %v308_v39 }
 0x1cc   :  { %v325_v44 = vmul.f32 0.125, %v323_v42  ;;  %v327_v45 = vmul.f32 %v309_v41, %v309_v41  ;;  %v328_v46 = vsub.f32 %v324_v40, %v326_v43  ;;  %v331_v52 = vsub.f32 %v789_v16, %v309_v41 }
 0x1ce   :  { %v329_v47 = vsub.f32 %v325_v44, %v327_v45  ;;  %v332_v48 = vadd.f32 1e-05, %v328_v46 }
 0x1d0   :  { %v333_v49 = vadd.f32 1e-05, %v329_v47  ;;  %611 = vrsqrt.f32 %v332_v48  ;;  %v484_v47 = vpop.permute.xlu1 %483 }
 0x1d2   :  { %613 = vrsqrt.f32 %v333_v49 }
 0x1dd   :  { %v612_v51 = vpop.eup %611 }
 0x1de   :  { %v336_v53 = vmul.f32 %v612_v51, %v330_v50 }
 0x1df   :  { %v614_v54 = vpop.eup %613 }
 0x1e0   :  { %v337_v56 = vmul.f32 %v614_v54, %v331_v52  ;;  %v343_v57 = vmul.f32 %v341_v55, %v336_v53  ;;  %v491_v52 = vpop.permute.xlu0 %490 }
 0x1e2   :  { %v344_v59 = vmul.f32 %v341_v55, %v337_v56  ;;  %v350_v60 = vadd.f32 %v348_v58, %v343_v57 }
 0x1e4   :  { %v351_v61 = vadd.f32 %v348_v58, %v344_v59  ;;  %v352_v63 = vmax.f32 %v350_v60, 0.0  ;;  %v437_v58 = vld [vmem:[%s824_s13] sm:$0xf]  ;;  %v500_v60 = vpop.permute.xlu1 %499 }
 0x1e6   :  { %v353_v62 = vmax.f32 %v351_v61, 0.0 }
 0x1e8   :  { %392 = vmatprep.subr.mxu0 %v353_v62 }
 0x1e9   :  { %393 = vmatpush1.msra.mxu0 %v352_v63 }
 0x1ea   :  { %600 = vmatmul.mubr.msk.f32.vlgmr.msra.gmra.mxu0 %vm215_vm2, %v294_v0 }
 0x2aa   :  { %v428_v3 = vpop.f32.mrf.mxu0 }
 0x2ab   :  { %v429_v4 = vadd.f32 %v428_v3, %v357_v1 }
 0x2ac   :  { %v430_v5 = vpop.f32.mrf.mxu0 }
 0x2ad   :  { %v433_v6 = vadd.f32 %v429_v4, %v783_v12  ;;  %v431_v7 = vadd.f32 %v430_v5, %v357_v1 }
 0x2af   :  { %v439_v8 = vrot.slane %v433_v6, 4  ;;  %v453_v9 = vmul.f32 %v433_v6, %v433_v6  ;;  %v434_v10 = vadd.f32 %v431_v7, %v789_v16 }
 0x2b1   :  { %v440_v11 = vadd.f32 %v439_v8, %v433_v6  ;;  %v455_v13 = vrot.slane %v453_v9, 4  ;;  %v445_v14 = vrot.slane %v434_v10, 4  ;;  %v454_v15 = vmul.f32 %v434_v10, %v434_v10 }
 0x2b3   :  { %v441_v18 = vrot.slane %v440_v11, 2  ;;  %v456_v19 = vadd.f32 %v455_v13, %v453_v9  ;;  %v446_v2 = vadd.f32 %v445_v14, %v434_v10  ;;  %v461_v20 = vrot.slane %v454_v15, 4 }
 0x2b5   :  { %v442_v22 = vadd.f32 %v441_v18, %v440_v11  ;;  %v457_v17 = vrot.slane %v456_v19, 2  ;;  %v447_v23 = vrot.slane %v446_v2, 2  ;;  %v462_v24 = vadd.f32 %v461_v20, %v454_v15 }
 0x2b7   :  { %v443_v25 = vrot.slane %v442_v22, 1  ;;  %v458_v26 = vadd.f32 %v457_v17, %v456_v19  ;;  %v448_v12 = vadd.f32 %v447_v23, %v446_v2  ;;  %v463_v27 = vrot.slane %v462_v24, 2 }
 0x2b9   :  { %v444_v28 = vadd.f32 %v443_v25, %v442_v22  ;;  %v459_v29 = vrot.slane %v458_v26, 1  ;;  %v449_v21 = vrot.slane %v448_v12, 1  ;;  %v464_v16 = vadd.f32 %v463_v27, %v462_v24 }
 0x2bb   :  { %v451_v30 = vmul.f32 0.125, %v444_v28  ;;  %v460_v31 = vadd.f32 %v459_v29, %v458_v26  ;;  %v465_v32 = vrot.slane %v464_v16, 1  ;;  %v450_v33 = vadd.f32 %v449_v21, %v448_v12 }
 0x2bd   :  { %v467_v34 = vmul.f32 0.125, %v460_v31  ;;  %v469_v35 = vmul.f32 %v451_v30, %v451_v30  ;;  %v466_v36 = vadd.f32 %v465_v32, %v464_v16  ;;  %v452_v37 = vmul.f32 0.125, %v450_v33 }
 0x2be   :  { %v473_v44 = vsub.f32 %v433_v6, %v451_v30 }
 0x2bf   :  { %v471_v38 = vsub.f32 %v467_v34, %v469_v35  ;;  %v468_v39 = vmul.f32 0.125, %v466_v36  ;;  %v470_v40 = vmul.f32 %v452_v37, %v452_v37  ;;  %v474_v48 = vsub.f32 %v434_v10, %v452_v37 }
 0x2c1   :  { %v475_v41 = vadd.f32 1e-05, %v471_v38  ;;  %v472_v42 = vsub.f32 %v468_v39, %v470_v40 }
 0x2c3   :  { %615 = vrsqrt.f32 %v475_v41  ;;  %v476_v43 = vadd.f32 1e-05, %v472_v42 }
 0x2c5   :  { %617 = vrsqrt.f32 %v476_v43 }
 0x2d0   :  { %v616_v45 = vpop.eup %615 }
 0x2d1   :  { %v479_v46 = vmul.f32 %v616_v45, %v473_v44 }
 0x2d2   :  { %v618_v49 = vpop.eup %617 }
 0x2d3   :  { %v486_v50 = vmul.f32 %v484_v47, %v479_v46  ;;  %v480_v51 = vmul.f32 %v618_v49, %v474_v48 }
 0x2d5   :  { %v487_v53 = vmul.f32 %v484_v47, %v480_v51  ;;  %v493_v54 = vadd.f32 %v491_v52, %v486_v50 }
 0x2d7   :  { %v494_v55 = vadd.f32 %v491_v52, %v487_v53  ;;  %v495_v57 = vmax.f32 %v493_v54, 0.0 }
 0x2d9   :  { %v496_v56 = vmax.f32 %v494_v55, 0.0 }
 0x2db   :  { %535 = vmatprep.subr.mxu1 %v496_v56 }
 0x2dc   :  { %536 = vmatpush1.msra.mxu1 %v495_v57 }
 0x2dd   :  { %601 = vmatmul.mubr.msk.f32.vlgmr.msra.gmra.mxu1 %vm215_vm2, %v437_v58 }
 0x39d   :  { %v571_v59 = vpop.f32.mrf.mxu1 }
 0x39e   :  { %v572_v62 = vadd.f32 %v571_v59, %v500_v60 }
 0x39f   :  { %v573_v61 = vpop.f32.mrf.mxu1 }
 0x3a0   :  { %v574_v63 = vadd.f32 %v573_v61, %v500_v60 }
 0x3a2   :  { %v578_v0 = vcombine.low %v572_v62, %v574_v63 }
 0x3a4   :  { %580 = vst [vmem:[#allocation2] sm:$0xff] %v578_v0 }
 0x3a5   :  { %630 = shalt.err (!%p627_p4)
}
 0x3a6   :  { %590 = dma.vmem_to_hbm [thread:$0]  %s588_s20, 128, %s826_s15, [#allocation3]  }
 0x3a7   :  { %639 = dma.done.wait [#allocation3], 128  }
 0x3a8   :  { %640 = vsyncadd [#allocation3], 4294967168 }
 0x3a9   :  { %594 = vsyncpa [#allocation3], 1 }

</bundles_post_ra>
